<compile_context>
chip_gen: v7x
topology: tpu7x:2x2x1
jax: 0.10.0
libtpu: 0.0.40
codegen_flags: <defaults>
</compile_context>

<pallas_src>
import functools

import jax
import jax.numpy as jnp
from jax import lax
from jax.experimental import pallas as pl
from jax.experimental.pallas import tpu as pltpu


def _flash_attn_kernel(q_ref, k_ref, v_ref, xres_ref, wo_ref, bo_ref, o_ref,
                       m_scr, l_scr, acc_scr, *, kv_tile, seq_len, mask_kv):
    """Flash attention + out projection + residual.

    Grid = (batch, q_tiles, kv_tiles); kv is the sequential reduction axis.

      q_ref   : (1, Tq, C)  pre-scaled Q tile (compute dtype), resident over kv
      k_ref   : (1, Tk, C)  K tile (pipelined along kv)
      v_ref   : (1, Tk, C)  V tile (pipelined along kv)
      xres_ref: (1, C, Tq)  residual tokens, channel-major (output layout)
      wo_ref  : (C, C)      out-proj weight in torch (out, in) layout (used NT)
      bo_ref  : (C, 1) f32  out-proj bias (channel-major)
      o_ref   : (1, C, Tq)  output block, channel-major, written at last kv step
      m_scr   : (Tq, 1) f32 online-softmax running max
      l_scr   : (Tq, 1) f32 online-softmax running sum
      acc_scr : (Tq, C) f32 un-normalized attention accumulator
    """
    ki = pl.program_id(2)
    nk = pl.num_programs(2)

    @pl.when(ki == 0)
    def _init():
        m_scr[...] = jnp.full(m_scr.shape, -jnp.inf, dtype=m_scr.dtype)
        l_scr[...] = jnp.zeros(l_scr.shape, dtype=l_scr.dtype)
        acc_scr[...] = jnp.zeros(acc_scr.shape, dtype=acc_scr.dtype)

    q = q_ref[0]                                   # (Tq, C)
    k = k_ref[0]                                   # (Tk, C)
    v = v_ref[0]                                   # (Tk, C)

    # scores = q @ k^T without materializing k.T (contract last axis of both).
    s = lax.dot_general(q, k, (((1,), (1,)), ((), ())),
                        preferred_element_type=jnp.float32)       # (Tq, Tk) f32

    if mask_kv:
        # Mask padded KV columns.  Finite large-negative keeps exp() at 0 with
        # no inf-inf NaN risk; the padding is < 128 so no tile is fully masked.
        col = ki * kv_tile + lax.broadcasted_iota(jnp.int32, s.shape, 1)
        s = jnp.where(col < seq_len, s, jnp.float32(-1e30))

    # Online softmax update (f32 statistics).
    m_prev = m_scr[...]
    m_new = jnp.maximum(m_prev, jnp.max(s, axis=-1, keepdims=True))
    alpha = jnp.exp(m_prev - m_new)                                # (Tq, 1)
    p = jnp.exp(s - m_new)                                         # (Tq, Tk)
    l_scr[...] = alpha * l_scr[...] + jnp.sum(p, axis=-1, keepdims=True)
    acc_scr[...] = alpha * acc_scr[...] + jnp.dot(
        p.astype(v.dtype), v, preferred_element_type=jnp.float32)  # (Tq, C)
    m_scr[...] = m_new

    @pl.when(ki == nk - 1)
    def _finalize():
        # Exact normalization (runs once per query tile -> negligible cost).
        attn = (acc_scr[...] / l_scr[...]).astype(wo_ref.dtype)    # (Tq, C)
        # out_cs = W_o @ attn^T -> (C, Tq): contract last axis of both operands,
        # producing the channel-major output layout directly (no transposes).
        out = lax.dot_general(wo_ref[...], attn, (((1,), (1,)), ((), ())),
                              preferred_element_type=jnp.float32)
        out = out + bo_ref[...] + xres_ref[0].astype(jnp.float32)  # bias + residual
        o_ref[0] = out.astype(o_ref.dtype)


def _vmem_capacity_bytes():
    try:
        info = pltpu.get_tpu_info()
        return int(getattr(info, "vmem_capacity_bytes", 64 * 1024 * 1024))
    except Exception:
        return 64 * 1024 * 1024           # conservative fallback (v7x-sized)


def _default_tile_target(vmem_cap):
    # 1024 tiles on 128-MiB parts (v5e/v6e), 512 on 64-MiB parts (v7x).
    return 1024 if vmem_cap > 96 * 1024 * 1024 else 512


def _pick_tile(s_pad, target):
    """Largest multiple of 128 that divides s_pad and is <= target (>=128)."""
    best = 128
    t = 128
    upper = min(target, s_pad)
    while t <= upper:
        if s_pad % t == 0:
            best = t
        t += 128
    return min(best, s_pad)


def _vmem_limit_bytes(tq, tk, c, compute_itemsize, io_itemsize, vmem_cap):
    f32, lane = 4, 128
    # Double-buffered pipelined blocks: q, k, v, residual, output, W_o, b_o.
    blocks = 2 * ((tq + 2 * tk) * c * compute_itemsize
                  + 2 * c * tq * io_itemsize
                  + c * c * compute_itemsize + c * lane * f32)
    # Scratch: m, l (lane-padded), acc.
    scratch = 2 * tq * lane * f32 + tq * c * f32
    # Live intermediates: s/p, p@v, attn/out temporaries.
    live = (2 * tq * tk + 2 * tq * c + 2 * c * tq) * f32
    est = blocks + scratch + live
    hard_cap = int(0.85 * vmem_cap)       # headroom for compiler scratch
    return int(min(max(2 * est, 16 * 1024 * 1024), hard_cap))


def vae_attention_block(x_nchw, params, *, q_tile=None, kv_tile=None,
                        compute_dtype=jnp.bfloat16):
    """x_nchw: (B, C, H, W). Returns (B, C, H, W) = x + SelfAttention(tokens)."""
    B, C, H, W = x_nchw.shape
    S = H * W
    out_dtype = x_nchw.dtype
    cdt = jnp.dtype(compute_dtype)
    prec = lax.Precision.HIGHEST

    x_cs = x_nchw.reshape(B, C, S)                                  # (B, C, S)
    x_tokens = jnp.transpose(x_cs, (0, 2, 1)).astype(cdt)           # (B, S, C)

    # ---- QKV projection hoisted out of the kernel: one GEMM over all tokens.
    # torch Linear: y = x @ W.T + b, W of shape (3C, C).
    w_in = params["in_proj_weight"].astype(cdt)                     # (3C, C)
    b_in = params["in_proj_bias"].astype(jnp.float32)               # (3C,)
    qkv = jnp.einsum("bsc,dc->bsd", x_tokens, w_in,
                     preferred_element_type=jnp.float32,
                     precision=prec) + b_in                          # (B, S, 3C) f32
    q, k, v = jnp.split(qkv, 3, axis=-1)
    q = q * (float(C) ** -0.5)            # fold 1/sqrt(d_head) (n_heads=1 -> d=C)
    q, k, v = q.astype(cdt), k.astype(cdt), v.astype(cdt)

    # ---- Tile selection (+ padding/masking when S is not a multiple of 128).
    vmem_cap = _vmem_capacity_bytes()
    target = _default_tile_target(vmem_cap)
    q_target = q_tile if q_tile is not None else target
    kv_target = kv_tile if kv_tile is not None else target

    if S <= 128:
        Tq = Tk = S_pad = S               # single full tile, block == full dims
    else:
        S_pad = pl.cdiv(S, 128) * 128
        Tq = _pick_tile(S_pad, q_target)
        Tk = _pick_tile(S_pad, kv_target)
    mask_kv = S_pad != S

    x_res = x_cs
    if mask_kv:
        pad = S_pad - S
        q = jnp.pad(q, ((0, 0), (0, pad), (0, 0)))
        k = jnp.pad(k, ((0, 0), (0, pad), (0, 0)))
        v = jnp.pad(v, ((0, 0), (0, pad), (0, 0)))
        x_res = jnp.pad(x_cs, ((0, 0), (0, 0), (0, pad)))

    nq = S_pad // Tq
    nk = S_pad // Tk

    wo = params["out_proj_weight"].astype(cdt)                      # (C, C) (out, in)
    bo = params["out_proj_bias"].reshape(C, 1).astype(jnp.float32)  # (C, 1)

    kernel = functools.partial(_flash_attn_kernel,
                               kv_tile=Tk, seq_len=S, mask_kv=mask_kv)

    out_cs = pl.pallas_call(
        kernel,
        out_shape=jax.ShapeDtypeStruct((B, C, S_pad), out_dtype),
        grid_spec=pltpu.PrefetchScalarGridSpec(
            num_scalar_prefetch=0,
            grid=(B, nq, nk),
            in_specs=[
                pl.BlockSpec((1, Tq, C), lambda b, qi, ki: (b, qi, 0)),   # q (scaled)
                pl.BlockSpec((1, Tk, C), lambda b, qi, ki: (b, ki, 0)),   # k
                pl.BlockSpec((1, Tk, C), lambda b, qi, ki: (b, ki, 0)),   # v
                pl.BlockSpec((1, C, Tq), lambda b, qi, ki: (b, 0, qi)),   # residual
                pl.BlockSpec((C, C), lambda b, qi, ki: (0, 0)),           # W_out
                pl.BlockSpec((C, 1), lambda b, qi, ki: (0, 0)),           # b_out
            ],
            out_specs=pl.BlockSpec((1, C, Tq), lambda b, qi, ki: (b, 0, qi)),
            scratch_shapes=[
                pltpu.VMEM((Tq, 1), jnp.float32),    # m (running max)
                pltpu.VMEM((Tq, 1), jnp.float32),    # l (running sum)
                pltpu.VMEM((Tq, C), jnp.float32),    # acc
            ],
        ),
        compiler_params=pltpu.CompilerParams(
            dimension_semantics=("parallel", "parallel", "arbitrary"),
            vmem_limit_bytes=_vmem_limit_bytes(
                Tq, Tk, C, cdt.itemsize, jnp.dtype(out_dtype).itemsize, vmem_cap),
        ),
    )(q, k, v, x_res, wo, bo)

    if mask_kv:
        out_cs = out_cs[:, :, :S]
    # Output is already channel-major; only a free reshape back to NCHW.
    return out_cs.reshape(B, C, H, W)


def init_params(key, channels):
    """Deterministic synthetic parameters matching the module's __init__ shapes."""
    k1, k2, k3, k4 = jax.random.split(key, 4)
    scale_in = 1.0 / jnp.sqrt(jnp.float32(channels))
    return {
        # SelfAttention(n_heads=1, d_embed=channels):
        #   in_proj = Linear(channels, 3*channels), out_proj = Linear(channels, channels)
        "in_proj_weight": jax.random.uniform(k1, (3 * channels, channels),
                                             jnp.float32, -scale_in, scale_in),
        "in_proj_bias": jax.random.uniform(k2, (3 * channels,),
                                           jnp.float32, -scale_in, scale_in),
        "out_proj_weight": jax.random.uniform(k3, (channels, channels),
                                              jnp.float32, -scale_in, scale_in),
        "out_proj_bias": jax.random.uniform(k4, (channels,),
                                            jnp.float32, -scale_in, scale_in),
        # GroupNorm(32, channels) exists in __init__ but is unused in forward().
        "groupnorm_weight": jnp.ones((channels,), jnp.float32),
        "groupnorm_bias": jnp.zeros((channels,), jnp.float32),
    }


def reference_forward(x_nchw, params):
    """Pure-JAX reference mirroring the PyTorch forward exactly (f32, exact matmuls)."""
    B, C, H, W = x_nchw.shape
    S = H * W
    prec = lax.Precision.HIGHEST
    x = jnp.transpose(x_nchw.reshape(B, C, S), (0, 2, 1))           # (B, S, C)
    qkv = jnp.einsum("bsc,dc->bsd", x, params["in_proj_weight"],
                     precision=prec) + params["in_proj_bias"]
    q, k, v = jnp.split(qkv, 3, axis=-1)
    scores = jnp.einsum("bqc,bkc->bqk", q, k,
                        precision=prec) / jnp.sqrt(jnp.float32(C))
    probs = jax.nn.softmax(scores, axis=-1)
    attn = jnp.einsum("bqk,bkc->bqc", probs, v, precision=prec)
    out = jnp.einsum("bqc,dc->bqd", attn, params["out_proj_weight"],
                     precision=prec) + params["out_proj_bias"]
    out = jnp.transpose(out, (0, 2, 1)).reshape(B, C, H, W)
    return out + x_nchw


if __name__ == "__main__":
    key = jax.random.PRNGKey(0)
    kx, kx2, kx3, kp = jax.random.split(key, 4)

    # channels must be divisible by 32 (GroupNorm(32, C) exists in __init__).
    B, C, H, W = 2, 32, 8, 8
    params = init_params(kp, C)

    # 1) Single-tile path (S = 64), f32 compute: exact softmax normalization
    #    (no approx reciprocal) -> tight tolerance.
    x = jax.random.normal(kx, (B, C, H, W), jnp.float32)
    out = jax.block_until_ready(
        vae_attention_block(x, params, compute_dtype=jnp.float32))
    ref = reference_forward(x, params)
    assert out.shape == (B, C, H, W)
    assert jnp.allclose(out, ref, atol=2e-3, rtol=2e-3), \
        "mismatch vs reference (single tile, f32)"

    # 2) Multi-tile path (S = 256, Tq = Tk = 128): exercises online-softmax
    #    accumulation across KV tiles with the default bf16 compute dtype.
    x2 = jax.random.normal(kx2, (B, C, 16, 16), jnp.float32)
    out2 = jax.block_until_ready(
        vae_attention_block(x2, params, q_tile=128, kv_tile=128))
    ref2 = reference_forward(x2, params)
    assert jnp.allclose(out2, ref2, atol=5e-2, rtol=5e-2), \
        "mismatch vs reference (tiled, bf16 compute)"

    # 3) Ragged path (S = 144 -> padded to 256 with masked KV columns).
    x3 = jax.random.normal(kx3, (1, C, 12, 12), jnp.float32)
    out3 = jax.block_until_ready(
        vae_attention_block(x3, params, compute_dtype=jnp.float32))
    ref3 = reference_forward(x3, params)
    assert jnp.allclose(out3, ref3, atol=2e-3, rtol=2e-3), \
        "mismatch vs reference (padded/masked, f32)"

    print("KERNEL_OK")
</pallas_src>

<mosaic_0001>
module attributes {stable_mosaic.version = 11 : i64} {
  func.func @_flash_attn_kernel(%arg0: i32, %arg1: i32, %arg2: i32, %arg3: memref<1x64x32xf32, #tpu.memory_space<vmem>>, %arg4: memref<1x64x32xf32, #tpu.memory_space<vmem>>, %arg5: memref<1x64x32xf32, #tpu.memory_space<vmem>>, %arg6: memref<1x32x64xf32, #tpu.memory_space<vmem>>, %arg7: memref<32x32xf32, #tpu.memory_space<vmem>>, %arg8: memref<32x1xf32, #tpu.memory_space<vmem>>, %arg9: memref<1x32x64xf32, #tpu.memory_space<vmem>>, %arg10: memref<64x1xf32, #tpu.memory_space<vmem>>, %arg11: memref<64x1xf32, #tpu.memory_space<vmem>>, %arg12: memref<64x32xf32, #tpu.memory_space<vmem>>) attributes {dimension_semantics = [#tpu.dimension_semantics<parallel>, #tpu.dimension_semantics<parallel>, #tpu.dimension_semantics<arbitrary>], iteration_bounds = array<i64: 2, 1, 1>, scalar_prefetch = 0 : i64, scratch_operands = 3 : i64, tpu.core_type = #tpu.core_type<tc>, window_params = [{transform_indices = @transform_0, window_bounds = array<i64: 1, 64, 32>}, {transform_indices = @transform_1, window_bounds = array<i64: 1, 64, 32>}, {transform_indices = @transform_2, window_bounds = array<i64: 1, 64, 32>}, {transform_indices = @transform_3, window_bounds = array<i64: 1, 32, 64>}, {pipeline_mode = #tpu.pipeline_mode<synchronous>, transform_indices = @transform_4, window_bounds = array<i64: 32, 32>}, {pipeline_mode = #tpu.pipeline_mode<synchronous>, transform_indices = @transform_5, window_bounds = array<i64: 32, 1>}, {transform_indices = @transform_6, window_bounds = array<i64: 1, 32, 64>}]} {
    %c0_i32 = arith.constant 0 : i32
    %0 = arith.cmpi eq, %arg2, %c0_i32 : i32
    %1 = arith.extui %0 : i1 to i32
    %c0_i32_0 = arith.constant 0 : i32
    %2 = arith.cmpi ne, %1, %c0_i32_0 : i32
    scf.if %2 {
      %cst_26 = arith.constant 0xFF800000 : f32
      %35 = vector.broadcast %cst_26 : f32 to vector<64x1xf32>
      %c0_27 = arith.constant 0 : index
      %c0_28 = arith.constant 0 : index
      %36 = vector.load %arg10[%c0_27, %c0_28] : memref<64x1xf32, #tpu.memory_space<vmem>>, vector<64x1xf32>
      tpu.vector_store %arg10[%c0_27, %c0_28], %35 {strides = array<i32>} : memref<64x1xf32, #tpu.memory_space<vmem>>, vector<64x1xf32>,
      %cst_29 = arith.constant 0.000000e+00 : f32
      %37 = vector.broadcast %cst_29 : f32 to vector<64x1xf32>
      %c0_30 = arith.constant 0 : index
      %c0_31 = arith.constant 0 : index
      %38 = vector.load %arg11[%c0_30, %c0_31] : memref<64x1xf32, #tpu.memory_space<vmem>>, vector<64x1xf32>
      tpu.vector_store %arg11[%c0_30, %c0_31], %37 {strides = array<i32>} : memref<64x1xf32, #tpu.memory_space<vmem>>, vector<64x1xf32>,
      %cst_32 = arith.constant 0.000000e+00 : f32
      %39 = vector.broadcast %cst_32 : f32 to vector<64x32xf32>
      %c0_33 = arith.constant 0 : index
      %c0_34 = arith.constant 0 : index
      %40 = vector.load %arg12[%c0_33, %c0_34] : memref<64x32xf32, #tpu.memory_space<vmem>>, vector<64x32xf32>
      tpu.vector_store %arg12[%c0_33, %c0_34], %39 {strides = array<i32>} : memref<64x32xf32, #tpu.memory_space<vmem>>, vector<64x32xf32>,
    } else {
    }
    %c0 = arith.constant 0 : index
    %c0_1 = arith.constant 0 : index
    %c0_2 = arith.constant 0 : index
    %3 = vector.load %arg3[%c0, %c0_1, %c0_2] : memref<1x64x32xf32, #tpu.memory_space<vmem>>, vector<1x64x32xf32>
    %4 = vector.shape_cast %3 : vector<1x64x32xf32> to vector<64x32xf32>
    %c0_3 = arith.constant 0 : index
    %c0_4 = arith.constant 0 : index
    %c0_5 = arith.constant 0 : index
    %5 = vector.load %arg4[%c0_3, %c0_4, %c0_5] : memref<1x64x32xf32, #tpu.memory_space<vmem>>, vector<1x64x32xf32>
    %6 = vector.shape_cast %5 : vector<1x64x32xf32> to vector<64x32xf32>
    %c0_6 = arith.constant 0 : index
    %c0_7 = arith.constant 0 : index
    %c0_8 = arith.constant 0 : index
    %7 = vector.load %arg5[%c0_6, %c0_7, %c0_8] : memref<1x64x32xf32, #tpu.memory_space<vmem>>, vector<1x64x32xf32>
    %8 = vector.shape_cast %7 : vector<1x64x32xf32> to vector<64x32xf32>
    %cst = arith.constant dense<0.000000e+00> : vector<64x64xf32>
    %9 = tpu.matmul %4, %6, %cst {dimension_numbers = #tpu.dot_dimension_numbers<[1], [1], [0], [0], [0, 0, 1, 0], [], []>} : vector<64x32xf32>, vector<64x32xf32>, vector<64x64xf32> -> vector<64x64xf32>
    %c0_9 = arith.constant 0 : index
    %c0_10 = arith.constant 0 : index
    %10 = vector.load %arg10[%c0_9, %c0_10] : memref<64x1xf32, #tpu.memory_space<vmem>>, vector<64x1xf32>
    %cst_11 = arith.constant dense<0xFF800000> : vector<64xf32>
    %11 = vector.multi_reduction <maximumf>, %9, %cst_11 [1] : vector<64x64xf32> to vector<64xf32>
    %12 = vector.shape_cast %11 : vector<64xf32> to vector<64x1xf32>
    %13 = arith.maximumf %10, %12 : vector<64x1xf32>
    %14 = arith.subf %10, %13 : vector<64x1xf32>
    %15 = math.exp %14 : vector<64x1xf32>
    %16 = vector.broadcast %13 : vector<64x1xf32> to vector<64x64xf32>
    %17 = arith.subf %9, %16 : vector<64x64xf32>
    %18 = math.exp %17 : vector<64x64xf32>
    %c0_12 = arith.constant 0 : index
    %c0_13 = arith.constant 0 : index
    %19 = vector.load %arg11[%c0_12, %c0_13] : memref<64x1xf32, #tpu.memory_space<vmem>>, vector<64x1xf32>
    %20 = arith.mulf %15, %19 : vector<64x1xf32>
    %cst_14 = arith.constant dense<0.000000e+00> : vector<64xf32>
    %21 = vector.multi_reduction <add>, %18, %cst_14 [1] : vector<64x64xf32> to vector<64xf32>
    %22 = vector.shape_cast %21 : vector<64xf32> to vector<64x1xf32>
    %23 = arith.addf %20, %22 : vector<64x1xf32>
    %c0_15 = arith.constant 0 : index
    %c0_16 = arith.constant 0 : index
    %24 = vector.load %arg11[%c0_15, %c0_16] : memref<64x1xf32, #tpu.memory_space<vmem>>, vector<64x1xf32>
    tpu.vector_store %arg11[%c0_15, %c0_16], %23 {strides = array<i32>} : memref<64x1xf32, #tpu.memory_space<vmem>>, vector<64x1xf32>,
    %c0_17 = arith.constant 0 : index
    %c0_18 = arith.constant 0 : index
    %25 = vector.load %arg12[%c0_17, %c0_18] : memref<64x32xf32, #tpu.memory_space<vmem>>, vector<64x32xf32>
    %26 = vector.broadcast %15 : vector<64x1xf32> to vector<64x32xf32>
    %27 = arith.mulf %26, %25 : vector<64x32xf32>
    %cst_19 = arith.constant dense<0.000000e+00> : vector<64x32xf32>
    %28 = tpu.matmul %18, %8, %cst_19 {dimension_numbers = #tpu.dot_dimension_numbers<[1], [0], [0], [1], [0, 0, 1, 1], [], []>} : vector<64x64xf32>, vector<64x32xf32>, vector<64x32xf32> -> vector<64x32xf32>
    %29 = arith.addf %27, %28 : vector<64x32xf32>
    %c0_20 = arith.constant 0 : index
    %c0_21 = arith.constant 0 : index
    %30 = vector.load %arg12[%c0_20, %c0_21] : memref<64x32xf32, #tpu.memory_space<vmem>>, vector<64x32xf32>
    tpu.vector_store %arg12[%c0_20, %c0_21], %29 {strides = array<i32>} : memref<64x32xf32, #tpu.memory_space<vmem>>, vector<64x32xf32>,
    %c0_22 = arith.constant 0 : index
    %c0_23 = arith.constant 0 : index
    %31 = vector.load %arg10[%c0_22, %c0_23] : memref<64x1xf32, #tpu.memory_space<vmem>>, vector<64x1xf32>
    tpu.vector_store %arg10[%c0_22, %c0_23], %13 {strides = array<i32>} : memref<64x1xf32, #tpu.memory_space<vmem>>, vector<64x1xf32>,
    %c0_i32_24 = arith.constant 0 : i32
    %32 = arith.cmpi eq, %arg2, %c0_i32_24 : i32
    %33 = arith.extui %32 : i1 to i32
    %c0_i32_25 = arith.constant 0 : i32
    %34 = arith.cmpi ne, %33, %c0_i32_25 : i32
    scf.if %34 {
      %c0_26 = arith.constant 0 : index
      %c0_27 = arith.constant 0 : index
      %35 = vector.load %arg12[%c0_26, %c0_27] : memref<64x32xf32, #tpu.memory_space<vmem>>, vector<64x32xf32>
      %c0_28 = arith.constant 0 : index
      %c0_29 = arith.constant 0 : index
      %36 = vector.load %arg11[%c0_28, %c0_29] : memref<64x1xf32, #tpu.memory_space<vmem>>, vector<64x1xf32>
      %37 = vector.broadcast %36 : vector<64x1xf32> to vector<64x32xf32>
      %38 = arith.divf %35, %37 : vector<64x32xf32>
      %c0_30 = arith.constant 0 : index
      %c0_31 = arith.constant 0 : index
      %39 = vector.load %arg7[%c0_30, %c0_31] : memref<32x32xf32, #tpu.memory_space<vmem>>, vector<32x32xf32>
      %cst_32 = arith.constant dense<0.000000e+00> : vector<32x64xf32>
      %40 = tpu.matmul %39, %38, %cst_32 {dimension_numbers = #tpu.dot_dimension_numbers<[1], [1], [0], [0], [0, 0, 1, 0], [], []>} : vector<32x32xf32>, vector<64x32xf32>, vector<32x64xf32> -> vector<32x64xf32>
      %c0_33 = arith.constant 0 : index
      %c0_34 = arith.constant 0 : index
      %41 = vector.load %arg8[%c0_33, %c0_34] : memref<32x1xf32, #tpu.memory_space<vmem>>, vector<32x1xf32>
      %42 = vector.broadcast %41 : vector<32x1xf32> to vector<32x64xf32>
      %43 = arith.addf %40, %42 : vector<32x64xf32>
      %c0_35 = arith.constant 0 : index
      %c0_36 = arith.constant 0 : index
      %c0_37 = arith.constant 0 : index
      %44 = vector.load %arg6[%c0_35, %c0_36, %c0_37] : memref<1x32x64xf32, #tpu.memory_space<vmem>>, vector<1x32x64xf32>
      %45 = vector.shape_cast %44 : vector<1x32x64xf32> to vector<32x64xf32>
      %46 = arith.addf %43, %45 : vector<32x64xf32>
      %c0_38 = arith.constant 0 : index
      %c0_39 = arith.constant 0 : index
      %c0_40 = arith.constant 0 : index
      %47 = vector.load %arg9[%c0_38, %c0_39, %c0_40] : memref<1x32x64xf32, #tpu.memory_space<vmem>>, vector<1x32x64xf32>
      %48 = vector.shape_cast %47 : vector<1x32x64xf32> to vector<32x64xf32>
      %49 = vector.shape_cast %46 : vector<32x64xf32> to vector<1x32x64xf32>
      tpu.vector_store %arg9[%c0_38, %c0_39, %c0_40], %49 {strides = array<i32>} : memref<1x32x64xf32, #tpu.memory_space<vmem>>, vector<1x32x64xf32>,
    } else {
    }
    return
  }
  func.func @transform_0(%arg0: i32, %arg1: i32, %arg2: i32) -> (i32, i32, i32) {
    %c0_i32 = arith.constant 0 : i32
    %c0_i32_0 = arith.constant 0 : i32
    return %arg0, %arg1, %c0_i32 : i32, i32, i32
  }
  func.func @transform_1(%arg0: i32, %arg1: i32, %arg2: i32) -> (i32, i32, i32) {
    %c0_i32 = arith.constant 0 : i32
    %c0_i32_0 = arith.constant 0 : i32
    return %arg0, %arg2, %c0_i32 : i32, i32, i32
  }
  func.func @transform_2(%arg0: i32, %arg1: i32, %arg2: i32) -> (i32, i32, i32) {
    %c0_i32 = arith.constant 0 : i32
    %c0_i32_0 = arith.constant 0 : i32
    return %arg0, %arg2, %c0_i32 : i32, i32, i32
  }
  func.func @transform_3(%arg0: i32, %arg1: i32, %arg2: i32) -> (i32, i32, i32) {
    %c0_i32 = arith.constant 0 : i32
    %c0_i32_0 = arith.constant 0 : i32
    return %arg0, %c0_i32, %arg1 : i32, i32, i32
  }
  func.func @transform_4(%arg0: i32, %arg1: i32, %arg2: i32) -> (i32, i32) {
    %c0_i32 = arith.constant 0 : i32
    %c0_i32_0 = arith.constant 0 : i32
    %c0_i32_1 = arith.constant 0 : i32
    return %c0_i32, %c0_i32_0 : i32, i32
  }
  func.func @transform_5(%arg0: i32, %arg1: i32, %arg2: i32) -> (i32, i32) {
    %c0_i32 = arith.constant 0 : i32
    %c0_i32_0 = arith.constant 0 : i32
    %c0_i32_1 = arith.constant 0 : i32
    return %c0_i32, %c0_i32_0 : i32, i32
  }
  func.func @transform_6(%arg0: i32, %arg1: i32, %arg2: i32) -> (i32, i32, i32) {
    %c0_i32 = arith.constant 0 : i32
    %c0_i32_0 = arith.constant 0 : i32
    return %arg0, %c0_i32, %arg1 : i32, i32, i32
  }
}

</mosaic_0001>

<bundles_post_ra>
// kernel: tpu_custom_call.1
= control target key start
LH: loop header
LB: loop body
LE: loop exit
PB: predicated region body
PF: predicated region fallthrough
CT: control target
= control target key end

     0   :  { %11 = vsyncpa [#allocation6], 0  ;;  %s2291_s0 = inlined_call_operand.vmem [shape: f32[2,64,32], index: 0, kind: input, shape index: {}]   ;;  %s2292_s1 = inlined_call_operand.vmem [shape: f32[2,64,32], index: 1, kind: input, shape index: {}]   ;;  %s2293_s2 = inlined_call_operand.vmem [shape: f32[2,64,32], index: 2, kind: input, shape index: {}]   ;;  %s2294_s3 = inlined_call_operand.vmem [shape: f32[2,32,64], index: 3, kind: input, shape index: {}]   ;;  %s2295_s4 = inlined_call_operand.vmem [shape: f32[32,32], index: 4, kind: input, shape index: {}]   ;;  %s2296_s5 = inlined_call_operand.vmem [shape: f32[32,1], index: 5, kind: input, shape index: {}]   ;;  %s2297_s6 = inlined_call_operand.hbm [shape: f32[2,32,64], index: 6, kind: output, shape index: {}]  }
   0x1   :  { %13 = vsyncpa [#allocation6 + $0x1], 0  ;;  %s1856_s21 = smov 0   ;;  %s1858_s22 = smov 0  }
   0x2   :  { %s1860_s23 = smov 0   ;;  %s1862_s24 = smov 0  }
   0x3   :  { %s1864_s25 = smov 0   ;;  %s1866_s26 = smov 0  }
   0x4 LB: > { %s1379_s27 = sadd.s32 4294967295, %s1813_s26   ;;  %s1380_s28 = sadd.s32 4294967294, %s1813_s26   ;;  %s1813_s26 = sphi %s1866_s26, %s19_s26   ;;  %s1809_s25 = sphi %s1864_s25, %s2306_s25   ;;  %s1805_s24 = sphi %s1862_s24, %s2305_s24   ;;  %s1801_s23 = sphi %s1860_s23, %s2304_s23   ;;  %s1797_s22 = sphi %s1858_s22, %s2303_s22   ;;  %s1793_s21 = sphi %s1856_s21, %s2302_s21  }
   0x5   : > { %s38_s29 = sadd.s32 1, %s1809_s25  ;;  %s201_s30 = sadd.s32 1, %s1801_s23 }
   0x6   : > { %p40_p0 = scmp.ge.s32.totalorder %s38_s29, 2  ;;  %p211_p1 = scmp.ne.s32.totalorder %s1801_s23, %s1797_s22 }
   0x7   : > { %p212_p2 = scmp.eq.s32.totalorder %s1379_s27, 1  ;;  %p217_p3 = scmp.ne.s32.totalorder %s1797_s22, %s1793_s21 }
   0x8   : > { %s2308_s29 = smov (%p40_p0, %s38_s29), 0  ;;  %p218_p5 = scmp.eq.s32.totalorder %s1380_s28, 1 }
   0x9   : > { %p1896_p4 = por %p212_p2, %p211_p1  ;;  %s196_s8 = ssub.s32 %s1809_s25, %s2308_s29 }
   0xa   : > { %p1383_p6 = scmp.ge.s32.totalorder %s1813_s26, 1  ;;  %p199_p7 = scmp.eq.s32.totalorder %s196_s8, 0 }
   0xb   : > { %p1903_p8 = por %p218_p5, %p217_p3  ;;  %p292_p9 = scmp.lt.s32.totalorder %s1813_s26, 3 }
   0xc   : > { %s1909_s10 = scalar_select %p199_p7, %s1801_s23, %s201_s30  }
   0xd   : > { %p293_p10 = pnand %p1383_p6, %p292_p9 }
   0xe   : > { %p353_p11 = scmp.lt.s32.totalorder (!%p293_p10), %s1805_s24, 1  ;;  %vm411_vm0 = vcmask (!%p293_p10), 261120   ;;  %vm394_vm2 = vcmask (!%p293_p10), 7168   ;;  %v1815_v21 = vmov (!%p293_p10), -inf   ;;  %vm606_vm3 = vcmask (!%p293_p10), 523264   ;;  %s349_s13 = sand.u32 (!%p293_p10), 1, %s1797_s22  }
   0xf   : > { %296 = sbr.rel (%p293_p10) target bundleno = 1130 (0x46a), region = 44  ;;  %vm1924_vm1 = vmpackc.low (!%p293_p10), %vm411_vm0, %vm411_vm0  ;;  %395 = vst.msk [vmem:[#allocation2] sm:$0xff] (!%p293_p10), %vm394_vm2, %v1815_v21  ;;  %v1816_v38 = vmov (!%p293_p10), 0   ;;  %v1817_v39 = vmov (!%p293_p10), 0.0   ;;  %s1384_s17 = sshll.u32 (!%p293_p10), %s349_s13, 5 }
  0x10   : > { %396 = vst.msk [vmem:[#allocation2 + $0x8] sm:$0xff] (!%p293_p10), %vm394_vm2, %v1815_v21  ;;  %397 = vst.msk [vmem:[#allocation2 + $0x10] sm:$0xff] (!%p293_p10), %vm394_vm2, %v1815_v21  ;;  %1685 = vset.pattern.permute.xlu0 (!%p293_p10), %v1816_v38  ;;  %1686 = vset.pattern.permute.xlu1 (!%p293_p10), %v1816_v38  ;;  %s1438_s19 = sshll.u32 (!%p293_p10), %s1805_s24, 9  ;;  %s1818_s8 = smov (!%p293_p10), [#allocation5]  }
  0x11   : > { %398 = vst.msk [vmem:[#allocation2 + $0x18] sm:$0xff] (!%p293_p10), %vm394_vm2, %v1815_v21  ;;  %399 = vst.msk [vmem:[#allocation2 + $0x20] sm:$0xff] (!%p293_p10), %vm394_vm2, %v1815_v21  ;;  %s2237_s28 = scalar_lea.hbm (!%p293_p10), %s2297_s6, %s1438_s19 }
  0x12   : > { %400 = vst.msk [vmem:[#allocation2 + $0x28] sm:$0xff] (!%p293_p10), %vm394_vm2, %v1815_v21  ;;  %401 = vst.msk [vmem:[#allocation2 + $0x30] sm:$0xff] (!%p293_p10), %vm394_vm2, %v1815_v21 }
  0x13   : > { %402 = vst.msk [vmem:[#allocation2 + $0x38] sm:$0xff] (!%p293_p10), %vm394_vm2, %v1815_v21  ;;  %403 = vst.msk [vmem:[#allocation3] sm:$0xff] (!%p293_p10), %vm394_vm2, %v1817_v39 }
  0x14   : > { %404 = vst.msk [vmem:[#allocation3 + $0x8] sm:$0xff] (!%p293_p10), %vm394_vm2, %v1817_v39  ;;  %405 = vst.msk [vmem:[#allocation3 + $0x10] sm:$0xff] (!%p293_p10), %vm394_vm2, %v1817_v39 }
  0x15   : > { %406 = vst.msk [vmem:[#allocation3 + $0x18] sm:$0xff] (!%p293_p10), %vm394_vm2, %v1817_v39  ;;  %407 = vst.msk [vmem:[#allocation3 + $0x20] sm:$0xff] (!%p293_p10), %vm394_vm2, %v1817_v39 }
  0x16   : > { %s1913_s11 = scalar_select %p353_p11, %s1805_s24, 1  ;;  %408 = vst.msk [vmem:[#allocation3 + $0x28] sm:$0xff] %vm394_vm2, %v1817_v39  ;;  %409 = vst.msk [vmem:[#allocation3 + $0x30] sm:$0xff] %vm394_vm2, %v1817_v39  ;;  %v2022_v40 = vld [vmem:[#allocation2] sm:$0xff] }
  0x17   : > { %410 = vst.msk [vmem:[#allocation3 + $0x38] sm:$0xff] %vm394_vm2, %v1817_v39  ;;  %v2027_v43 = vld [vmem:[#allocation2 + $0x8] sm:$0xff]  ;;  %v2029_v44 = vld [vmem:[#allocation2 + $0x10] sm:$0xff]  ;;  %s2245_s24 = scalar_lea.sflag [#allocation6], %s349_s13 }
  0x18   : > { %s1916_s12 = sshll.u32 %s1913_s11, 6  ;;  %412 = vst.msk [vmem:[#allocation4] sm:$0xff] %vm411_vm0, %v1817_v39  ;;  %413 = vst.msk [vmem:[#allocation4 + $0x8] sm:$0xff] %vm411_vm0, %v1817_v39  ;;  %v2050_v53 = vld [vmem:[#allocation2 + $0x18] sm:$0xff]  ;;  %v2052_v54 = vld [vmem:[#allocation2 + $0x20] sm:$0xff] }
  0x19   : > { %s370_s15 = scalar_lea.vmem %s2292_s1, %s1916_s12  ;;  %s1932_s18 = scalar_lea.vmem %s2291_s0, %s1916_s12  ;;  %414 = vst.msk [vmem:[#allocation4 + $0x10] sm:$0xff] %vm411_vm0, %v1817_v39  ;;  %415 = vst.msk [vmem:[#allocation4 + $0x18] sm:$0xff] %vm411_vm0, %v1817_v39 }
  0x1a   : > { %v428_v1 = vld [vmem:[%s370_s15] sm:$0xff]  ;;  %v429_v2 = vld [vmem:[%s370_s15 + $0x8] sm:$0xff]  ;;  %v430_v3 = vld [vmem:[%s370_s15 + $0x10] sm:$0xff]  ;;  %416 = vst.msk [vmem:[#allocation4 + $0x20] sm:$0xff] %vm411_vm0, %v1817_v39  ;;  %s2035_s27 = scalar_lea.vmem %s2293_s2, %s1916_s12  ;;  %s1437_s12 = sshll.u32 %s1913_s11, 5 }
  0x1b   : > { %v1561_v4 = vpack.c.bf16 %v429_v2, %v428_v1  ;;  %v431_v5 = vld [vmem:[%s370_s15 + $0x18] sm:$0xff]  ;;  %v420_v7 = vld [vmem:[%s1932_s18] sm:$0xff]  ;;  %v433_v9 = vld [vmem:[%s370_s15 + $0x28] sm:$0xff]  ;;  %417 = vst.msk [vmem:[#allocation4 + $0x28] sm:$0xff] %vm411_vm0, %v1817_v39  ;;  %s389_s16 = scalar_lea.vmem %s2294_s3, %s1437_s12  ;;  %s1739_s12 = sshll.u32 %s1818_s8, 4  ;;  %s1740_s12 = int_to_ptr.vmem [resolvable:$false] %s1739_s12 }
  0x1c   : > { %v1567_v6 = vpack.c.bf16 %v431_v5, %v430_v3  ;;  %1499 = vmatprep.mubr.msk.f32.mxu0 %vm411_vm0, %v420_v7  ;;  %v432_v8 = vld [vmem:[%s370_s15 + $0x20] sm:$0xff]  ;;  %v434_v11 = vld [vmem:[%s370_s15 + $0x30] sm:$0xff]  ;;  %v435_v12 = vld [vmem:[%s370_s15 + $0x38] sm:$0xff]  ;;  %418 = vst.msk [vmem:[#allocation4 + $0x30] sm:$0xff] %vm411_vm0, %v1817_v39  ;;  %s1741_s14 = scalar_lea.vmem %s1740_s12, 1024 }
  0x1d   : > { %1563 = vmatprep.subr.msk.bf16.mxu0 %vm1924_vm1, %v1561_v4  ;;  %v1573_v10 = vpack.c.bf16 %v433_v9, %v432_v8  ;;  %v1579_v13 = vpack.c.bf16 %v435_v12, %v434_v11  ;;  %v421_v14 = vld [vmem:[%s1932_s18 + $0x8] sm:$0xff]  ;;  %v422_v15 = vld [vmem:[%s1932_s18 + $0x10] sm:$0xff]  ;;  %v423_v16 = vld [vmem:[%s1932_s18 + $0x18] sm:$0xff]  ;;  %419 = vst.msk [vmem:[#allocation4 + $0x38] sm:$0xff] %vm411_vm0, %v1817_v39 }
  0x1e   : > { %1566 = vmatpush3.bf16.xpose.msk.msra.mxu0 %vm1924_vm1, %v1561_v4  ;;  %v424_v17 = vld [vmem:[%s1932_s18 + $0x20] sm:$0xff]  ;;  %v425_v18 = vld [vmem:[%s1932_s18 + $0x28] sm:$0xff]  ;;  %v426_v19 = vld [vmem:[%s1932_s18 + $0x30] sm:$0xff] }
  0x1f   : > { %1569 = vmatprep.subr.msk.bf16.mxu0 %vm1924_vm1, %v1567_v6  ;;  %v427_v20 = vld [vmem:[%s1932_s18 + $0x38] sm:$0xff]  ;;  %v436_v46 = vld [vmem:[%s2035_s27] sm:$0xff]  ;;  %v437_v47 = vld [vmem:[%s2035_s27 + $0x8] sm:$0xff]  ;;  %s351_s18 = scalar_lea.vmem [#allocation5], %s1384_s17 }
  0x20   : > { %v1585_v50 = vpack.c.bf16 %v437_v47, %v436_v46  ;;  %v438_v57 = vld [vmem:[%s2035_s27 + $0x10] sm:$0xff]  ;;  %v439_v58 = vld [vmem:[%s2035_s27 + $0x18] sm:$0xff]  ;;  %v2071_v1 = vld [vmem:[#allocation2 + $0x28] sm:$0xff]  ;;  %s1244_s11 = sshll.u32 %s351_s18, 4  ;;  %s2239_s11 = int_to_ptr.vmem [resolvable:$true] %s1244_s11 }
  0x21   : > { %v1589_v61 = vpack.c.bf16 %v439_v58, %v438_v57  ;;  %v2073_v2 = vld [vmem:[#allocation2 + $0x30] sm:$0xff]  ;;  %v440_v5 = vld [vmem:[%s2035_s27 + $0x20] sm:$0xff]  ;;  %v2092_v12 = vld [vmem:[#allocation2 + $0x38] sm:$0xff]  ;;  %s1735_s30 = scalar_lea.vmem %s2239_s11, 512  ;;  %p1742_p1 = scmp.lt.s32.totalorder %s2239_s11, %s1740_s12 }
  0x22   : > { %1586 = vmatprep.subr.bf16.mxu1 %v1585_v50  ;;  %p1736_p12 = scmp.ne.s32.totalorder %s2239_s11, %s1735_s30  ;;  %p1743_p2 = scmp.lt.s32.totalorder %s1741_s14, %s1735_s30 }
  0x23   : > { %1588 = vmatpush3.bf16.msra.mxu1 %v1585_v50 }
  0x24   : > { %1590 = vmatprep.subr.bf16.mxu1 %v1589_v61  ;;  %p1737_p13 = pnand %p1736_p12, %p1896_p4  ;;  %p1744_p3 = por %p1743_p2, %p1742_p1 }
  0x26   : > { %1572 = vmatpush3.bf16.xpose.msk.msra.mxu0 %vm1924_vm1, %v1567_v6  ;;  %v441_v6 = vld [vmem:[%s2035_s27 + $0x28] sm:$0xff]  ;;  %p1738_p0 = pneg %p1737_p13 }
  0x27   : > { %1575 = vmatprep.subr.msk.bf16.mxu0 %vm1924_vm1, %v1573_v10  ;;  %1592 = vmatpush3.bf16.msra.mxu1 %v1589_v61  ;;  %v1593_v9 = vpack.c.bf16 %v441_v6, %v440_v5 }
  0x28   : > { %p1745_p5 = pnand %p1744_p3, %p1738_p0 }
  0x29   : > { %1594 = vmatprep.subr.bf16.mxu1 %v1593_v9 }
  0x2b   : > { %1596 = vmatpush3.bf16.msra.mxu1 %v1593_v9 }
  0x2e   : > { %1578 = vmatpush3.bf16.xpose.msk.msra.mxu0 %vm1924_vm1, %v1573_v10 }
  0x2f   : > { %1581 = vmatprep.subr.msk.bf16.mxu0 %vm1924_vm1, %v1579_v13 }
  0x36   : > { %1584 = vmatpush3.bf16.xpose.msk.msra.mxu0 %vm1924_vm1, %v1579_v13 }
  0x3d   : > { %1500 = vmatmul.mubr.msk.f32.vlgmr.msra.gmra.mrb[0].mxu0 %vm411_vm0, %v421_v14 }
  0x3e   : > { %1502 = vmatprep.mubr.msk.f32.mxu0 %vm411_vm0, %v422_v15  ;;  %v442_v15 = vld [vmem:[%s2035_s27 + $0x30] sm:$0xff] }
  0x41   : > { %1503 = vmatmul.mubr.msk.f32.gmra.mrb[2].mxu0 %vm411_vm0, %v423_v16  ;;  %v443_v16 = vld [vmem:[%s2035_s27 + $0x38] sm:$0xff] }
  0x42   : > { %1505 = vmatprep.mubr.msk.f32.mxu0 %vm411_vm0, %v424_v17 }
  0x45   : > { %1506 = vmatmul.mubr.msk.f32.gmra.mrb[4].mxu0 %vm411_vm0, %v425_v18  ;;  %v1597_v18 = vpack.c.bf16 %v443_v16, %v442_v15 }
  0x46   : > { %1508 = vmatprep.mubr.msk.f32.mxu0 %vm411_vm0, %v426_v19 }
  0x47   : > { %1598 = vmatprep.subr.bf16.mxu1 %v1597_v18 }
  0x48   : > { %1600 = vmatpush3.bf16.msra.mxu1 %v1597_v18 }
  0x49   : > { %1509 = vmatmul.mubr.msk.f32.gmra.mrb[6].mxu0 %vm411_vm0, %v427_v20 }
 0x110   : > { %v1974_v22 = vpop.f32.mrb[0].mxu0 }
 0x111   : > { %v1976_v23 = vpop.f32.mrb[1].mxu0  ;;  %v610_v27 = vsel %vm606_vm3, %v1974_v22, -inf }
 0x112   : > { %v607_v24 = vsel %vm606_vm3, %v1976_v23, -inf }
 0x113   : > { %608 = vmax.xlane.f32.xlu0 %v607_v24 }
 0x114   : > { %v1980_v25 = vpop.f32.mrb[2].mxu0 }
 0x115   : > { %v1982_v26 = vpop.f32.mrb[3].mxu0  ;;  %v616_v29 = vsel %vm606_vm3, %v1980_v25, -inf }
 0x116   : > { %v613_v28 = vsel %vm606_vm3, %v1982_v26, -inf }
 0x117   : > { %611 = vmax.xlane.f32.xlu0 %v610_v27  ;;  %614 = vmax.xlane.f32.xlu1 %v613_v28 }
 0x118   : > { %v1990_v30 = vpop.f32.mrb[4].mxu0 }
 0x119   : > { %v1992_v31 = vpop.f32.mrb[5].mxu0  ;;  %v622_v33 = vsel %vm606_vm3, %v1990_v30, -inf }
 0x11a   : > { %v619_v32 = vsel %vm606_vm3, %v1992_v31, -inf }
 0x11b   : > { %617 = vmax.xlane.f32.xlu1 %v616_v29  ;;  %620 = vmax.xlane.f32.xlu0 %v619_v32 }
 0x11c   : > { %v1998_v34 = vpop.f32.mrb[6].mxu0 }
 0x11d   : > { %v2000_v35 = vpop.f32.mrb[7].mxu0  ;;  %v628_v37 = vsel %vm606_vm3, %v1998_v34, -inf }
 0x11e   : > { %v625_v36 = vsel %vm606_vm3, %v2000_v35, -inf }
 0x11f   : > { %623 = vmax.xlane.f32.xlu1 %v622_v33  ;;  %626 = vmax.xlane.f32.xlu0 %v625_v36 }
 0x123   : > { %629 = vmax.xlane.f32.xlu1 %v628_v37 }
 0x1a0   : > { %v609_v41 = vpop.xlane.xlu0 %608 }
 0x1a1   : > { %v2025_v42 = vmax.f32 %v2022_v40, %v609_v41 }
 0x1a3   : > { %v639_v45 = vsub.f32 %v2022_v40, %v2025_v42  ;;  %985 = vst.msk [vmem:[#allocation2] sm:$0xff] %vm394_vm2, %v2025_v42  ;;  %665 = vperm.xlu0 %1685, %v2025_v42  }
 0x1a4   : > { %v612_v48 = vpop.xlane.xlu0 %611  ;;  %v615_v49 = vpop.xlane.xlu1 %614 }
 0x1a5   : > { %v2045_v51 = vmax.f32 %v2027_v43, %v612_v48  ;;  %v2048_v52 = vmax.f32 %v2029_v44, %v615_v49 }
 0x1a7   : > { %v640_v55 = vsub.f32 %v2027_v43, %v2045_v51  ;;  %986 = vst.msk [vmem:[#allocation2 + $0x8] sm:$0xff] %vm394_vm2, %v2045_v51  ;;  %v641_v56 = vsub.f32 %v2029_v44, %v2048_v52  ;;  %987 = vst.msk [vmem:[#allocation2 + $0x10] sm:$0xff] %vm394_vm2, %v2048_v52  ;;  %670 = vperm.xlu1 %1686, %v2045_v51   ;;  %v727_v51 = vld [vmem:[#allocation3] sm:$0xff] }
 0x1a8   : > { %v618_v59 = vpop.xlane.xlu1 %617  ;;  %v621_v60 = vpop.xlane.xlu0 %620 }
 0x1a9   : > { %v2066_v62 = vmax.f32 %v2050_v53, %v618_v59  ;;  %v2069_v63 = vmax.f32 %v2052_v54, %v621_v60 }
 0x1ab   : > { %v642_v3 = vsub.f32 %v2050_v53, %v2066_v62  ;;  %988 = vst.msk [vmem:[#allocation2 + $0x18] sm:$0xff] %vm394_vm2, %v2066_v62  ;;  %675 = vperm.xlu1 %1686, %v2048_v52   ;;  %v643_v4 = vsub.f32 %v2052_v54, %v2069_v63  ;;  %989 = vst.msk [vmem:[#allocation2 + $0x20] sm:$0xff] %vm394_vm2, %v2069_v63 }
 0x1ac   : > { %v624_v7 = vpop.xlane.xlu1 %623  ;;  %v627_v8 = vpop.xlane.xlu0 %626 }
 0x1ad   : > { %v2087_v10 = vmax.f32 %v2071_v1, %v624_v7  ;;  %v2090_v11 = vmax.f32 %v2073_v2, %v627_v8  ;;  %v653_v43 = vmul.f32 1.442695, %v642_v3  ;;  %v655_v40 = vmul.f32 1.442695, %v643_v4 }
 0x1af   : > { %v644_v13 = vsub.f32 %v2071_v1, %v2087_v10  ;;  %990 = vst.msk [vmem:[#allocation2 + $0x28] sm:$0xff] %vm394_vm2, %v2087_v10  ;;  %680 = vperm.xlu1 %1686, %v2066_v62   ;;  %v645_v14 = vsub.f32 %v2073_v2, %v2090_v11  ;;  %991 = vst.msk [vmem:[#allocation2 + $0x30] sm:$0xff] %vm394_vm2, %v2090_v11  ;;  %v729_v62 = vld [vmem:[#allocation3 + $0x10] sm:$0xff]  ;;  %v730_v1 = vld [vmem:[#allocation3 + $0x18] sm:$0xff] }
 0x1b0   : > { %v630_v17 = vpop.xlane.xlu1 %629 }
 0x1b1   : > { %v2106_v19 = vmax.f32 %v2092_v12, %v630_v17  ;;  %v657_v44 = vmul.f32 1.442695, %v644_v13  ;;  %v659_v54 = vmul.f32 1.442695, %v645_v14 }
 0x1b3   : > { %685 = vperm.xlu1 %1686, %v2069_v63   ;;  %v646_v20 = vsub.f32 %v2092_v12, %v2106_v19  ;;  %992 = vst.msk [vmem:[#allocation2 + $0x38] sm:$0xff] %vm394_vm2, %v2106_v19 }
 0x1b5   : > { %v661_v13 = vmul.f32 1.442695, %v646_v20 }
 0x1b7   : > { %690 = vperm.xlu1 %1686, %v2087_v10  }
 0x1bb   : > { %695 = vperm.xlu1 %1686, %v2090_v11   ;;  %v731_v11 = vld [vmem:[#allocation3 + $0x20] sm:$0xff] }
 0x1bf   : > { %700 = vperm.xlu1 %1686, %v2106_v19   ;;  %v732_v19 = vld [vmem:[#allocation3 + $0x28] sm:$0xff] }
 0x222   : > { %v666_v21 = vpop.permute.xlu0 %665 }
 0x223   : > { %v703_v24 = vsub.f32 %v1976_v23, %v666_v21 }
 0x225   : > { %v711_v27 = vmul.f32 1.442695, %v703_v24  ;;  %v649_v24 = vmul.f32 1.442695, %v640_v55  ;;  %v728_v55 = vld [vmem:[#allocation3 + $0x8] sm:$0xff] }
 0x226   : > { %v671_v28 = vpop.permute.xlu1 %670 }
 0x227   : > { %1687 = vpow2.f32 %v711_v27  ;;  %v704_v29 = vsub.f32 %v1974_v22, %v671_v28  ;;  %v647_v27 = vmul.f32 1.442695, %v639_v45 }
 0x229   : > { %v713_v32 = vmul.f32 1.442695, %v704_v29 }
 0x22a   : > { %v676_v33 = vpop.permute.xlu1 %675 }
 0x22b   : > { %1689 = vpow2.f32 %v713_v32  ;;  %v705_v36 = vsub.f32 %v1982_v26, %v676_v33  ;;  %v651_v32 = vmul.f32 1.442695, %v641_v56 }
 0x22d   : > { %v715_v37 = vmul.f32 1.442695, %v705_v36 }
 0x22e   : > { %v681_v38 = vpop.permute.xlu1 %680 }
 0x22f   : > { %1691 = vpow2.f32 %v715_v37  ;;  %v706_v39 = vsub.f32 %v1980_v25, %v681_v38 }
 0x231   : > { %v1688_v41 = vpop.eup %1687  ;;  %v717_v46 = vmul.f32 1.442695, %v706_v39 }
 0x232   : > { %v686_v47 = vpop.permute.xlu1 %685  ;;  %1527 = vmatprep.mubr.msk.f32.mxu1 %vm606_vm3, %v1688_v41  ;;  %v743_v23 = vsel %vm606_vm3, %v1688_v41, 0.0 }
 0x233   : > { %1693 = vpow2.f32 %v717_v46  ;;  %v707_v22 = vsub.f32 %v1992_v31, %v686_v47  ;;  %744 = vadd.xlane.f32.xlu1 %v743_v23 }
 0x235   : > { %v1690_v48 = vpop.eup %1689  ;;  %v719_v49 = vmul.f32 1.442695, %v707_v22 }
 0x236   : > { %v691_v50 = vpop.permute.xlu1 %690  ;;  %1528 = vmatmul.mubr.msk.f32.vlgmr.msra.gmra.mrb[0].mxu1 %vm606_vm3, %v1690_v48  ;;  %v746_v26 = vsel %vm606_vm3, %v1690_v48, 0.0 }
 0x237   : > { %1695 = vpow2.f32 %v719_v49  ;;  %v708_v25 = vsub.f32 %v1990_v30, %v691_v50  ;;  %747 = vadd.xlane.f32.xlu0 %v746_v26  ;;  %v733_v50 = vld [vmem:[#allocation3 + $0x30] sm:$0xff] }
 0x239   : > { %v1692_v57 = vpop.eup %1691  ;;  %v721_v58 = vmul.f32 1.442695, %v708_v25 }
 0x23a   : > { %v696_v59 = vpop.permute.xlu1 %695  ;;  %1530 = vmatprep.mubr.msk.f32.mxu1 %vm606_vm3, %v1692_v57  ;;  %v749_v60 = vsel %vm606_vm3, %v1692_v57, 0.0 }
 0x23b   : > { %1697 = vpow2.f32 %v721_v58  ;;  %v709_v31 = vsub.f32 %v2000_v35, %v696_v59  ;;  %750 = vadd.xlane.f32.xlu0 %v749_v60  ;;  %v734_v60 = vld [vmem:[#allocation3 + $0x38] sm:$0xff] }
 0x23d   : > { %v1694_v61 = vpop.eup %1693  ;;  %v723_v5 = vmul.f32 1.442695, %v709_v31 }
 0x23e   : > { %v701_v6 = vpop.permute.xlu1 %700  ;;  %1531 = vmatmul.mubr.msk.f32.gmra.mrb[2].mxu1 %vm606_vm3, %v1694_v61  ;;  %v752_v7 = vsel %vm606_vm3, %v1694_v61, 0.0 }
 0x23f   : > { %1699 = vpow2.f32 %v723_v5  ;;  %v710_v30 = vsub.f32 %v1998_v34, %v701_v6  ;;  %753 = vadd.xlane.f32.xlu1 %v752_v7 }
 0x241   : > { %v1696_v8 = vpop.eup %1695  ;;  %v725_v9 = vmul.f32 1.442695, %v710_v30 }
 0x242   : > { %1533 = vmatprep.mubr.msk.f32.mxu1 %vm606_vm3, %v1696_v8  ;;  %v755_v15 = vsel %vm606_vm3, %v1696_v8, 0.0 }
 0x243   : > { %1701 = vpow2.f32 %v725_v9  ;;  %756 = vadd.xlane.f32.xlu0 %v755_v15  ;;  %v1072_v9 = vld [vmem:[%s2296_s5] sm:$0xff] }
 0x244   : > { %1703 = vpow2.f32 %v649_v24  ;;  %v784_v24 = vld [vmem:[#allocation4] sm:$0xff] }
 0x245   : > { %v1698_v35 = vpop.eup %1697  ;;  %1705 = vpow2.f32 %v647_v27 }
 0x246   : > { %1534 = vmatmul.mubr.msk.f32.gmra.mrb[4].mxu1 %vm606_vm3, %v1698_v35  ;;  %v758_v16 = vsel %vm606_vm3, %v1698_v35, 0.0  ;;  %1707 = vpow2.f32 %v651_v32  ;;  %v1073_v35 = vld [vmem:[%s2296_s5 + $0x8] sm:$0xff] }
 0x247   : > { %759 = vadd.xlane.f32.xlu1 %v758_v16  ;;  %1709 = vpow2.f32 %v653_v43  ;;  %v1074_v16 = vld [vmem:[%s2296_s5 + $0x10] sm:$0xff] }
 0x248   : > { %1711 = vpow2.f32 %v655_v40 }
 0x249   : > { %v1700_v17 = vpop.eup %1699  ;;  %1713 = vpow2.f32 %v657_v44 }
 0x24a   : > { %1536 = vmatprep.mubr.msk.f32.mxu1 %vm606_vm3, %v1700_v17  ;;  %v761_v34 = vsel %vm606_vm3, %v1700_v17, 0.0  ;;  %1715 = vpow2.f32 %v659_v54  ;;  %v1075_v17 = vld [vmem:[%s2296_s5 + $0x18] sm:$0xff] }
 0x24b   : > { %762 = vadd.xlane.f32.xlu0 %v761_v34  ;;  %1717 = vpow2.f32 %v661_v13  ;;  %v1068_v34 = vld [vmem:[%s2295_s4] sm:$0xff] }
 0x24c   : > { %v788_v13 = vld [vmem:[#allocation4 + $0x20] sm:$0xff] }
 0x24d   : > { %v1702_v18 = vpop.eup %1701 }
 0x24e   : > { %1537 = vmatmul.mubr.msk.f32.gmra.mrb[6].mxu1 %vm606_vm3, %v1702_v18  ;;  %v764_v21 = vsel %vm606_vm3, %v1702_v18, 0.0  ;;  %v1704_v28 = vpop.eup %1703  ;;  %v785_v18 = vld [vmem:[#allocation4 + $0x8] sm:$0xff] }
 0x24f   : > { %765 = vadd.xlane.f32.xlu1 %v764_v21  ;;  %v1706_v29 = vpop.eup %1705  ;;  %v736_v52 = vmul.f32 %v1704_v28, %v728_v55  ;;  %1555 = vmatprep.mubr.msk.f32.mxu1 %vm411_vm0, %v1068_v34 }
 0x250   : > { %v735_v42 = vmul.f32 %v1706_v29, %v727_v51  ;;  %v1708_v53 = vpop.eup %1707 }
 0x251   : > { %v737_v63 = vmul.f32 %v1708_v53, %v729_v62  ;;  %v1710_v4 = vpop.eup %1709 }
 0x252   : > { %v738_v38 = vmul.f32 %v1710_v4, %v730_v1  ;;  %v1712_v39 = vpop.eup %1711 }
 0x253   : > { %v739_v46 = vmul.f32 %v1712_v39, %v731_v11  ;;  %v1714_v47 = vpop.eup %1713 }
 0x254   : > { %v740_v22 = vmul.f32 %v1714_v47, %v732_v19  ;;  %v1716_v48 = vpop.eup %1715 }
 0x255   : > { %v741_v57 = vmul.f32 %v1716_v48, %v733_v50  ;;  %v1718_v58 = vpop.eup %1717 }
 0x256   : > { %v742_v5 = vmul.f32 %v1718_v58, %v734_v60  ;;  %v791_v60 = vld [vmem:[#allocation4 + $0x38] sm:$0xff] }
 0x260   : > { %799 = vperm.xlu1 %1686, %v1704_v28  }
 0x261   : > { %794 = vperm.xlu0 %1685, %v1706_v29  }
 0x2c0   : > { %v745_v45 = vpop.xlane.xlu1 %744 }
 0x2c1   : > { %v767_v33 = vadd.f32 %v745_v45, %v735_v42 }
 0x2c3   : > { %776 = vst.msk [vmem:[#allocation3] sm:$0xff] %vm394_vm2, %v767_v33 }
 0x2c4   : > { %v748_v56 = vpop.xlane.xlu0 %747 }
 0x2c5   : > { %v768_v3 = vadd.f32 %v748_v56, %v736_v52  ;;  %v786_v56 = vld [vmem:[#allocation4 + $0x10] sm:$0xff] }
 0x2c7   : > { %777 = vst.msk [vmem:[#allocation3 + $0x8] sm:$0xff] %vm394_vm2, %v768_v3 }
 0x2c8   : > { %v751_v36 = vpop.xlane.xlu0 %750 }
 0x2c9   : > { %v769_v10 = vadd.f32 %v751_v36, %v737_v63  ;;  %v787_v63 = vld [vmem:[#allocation4 + $0x18] sm:$0xff] }
 0x2ca   : > { %v1004_v37 = vld [vmem:[#allocation3] sm:$0xff] }
 0x2cb   : > { %778 = vst.msk [vmem:[#allocation3 + $0x10] sm:$0xff] %vm394_vm2, %v769_v10  ;;  %1014 = vperm.xlu1 %1686, %v1004_v37  }
 0x2cc   : > { %v754_v2 = vpop.xlane.xlu1 %753 }
 0x2cd   : > { %v770_v14 = vadd.f32 %v754_v2, %v738_v38 }
 0x2ce   : > { %v1005_v41 = vld [vmem:[#allocation3 + $0x8] sm:$0xff] }
 0x2cf   : > { %779 = vst.msk [vmem:[#allocation3 + $0x18] sm:$0xff] %vm394_vm2, %v770_v14  ;;  %804 = vperm.xlu1 %1686, %v1708_v53   ;;  %1019 = vperm.xlu0 %1685, %v1005_v41   ;;  %v789_v14 = vld [vmem:[#allocation4 + $0x28] sm:$0xff] }
 0x2d0   : > { %v757_v12 = vpop.xlane.xlu0 %756 }
 0x2d1   : > { %v771_v20 = vadd.f32 %v757_v12, %v739_v46 }
 0x2d2   : > { %v1006_v23 = vld [vmem:[#allocation3 + $0x10] sm:$0xff] }
 0x2d3   : > { %780 = vst.msk [vmem:[#allocation3 + $0x20] sm:$0xff] %vm394_vm2, %v771_v20  ;;  %809 = vperm.xlu0 %1685, %v1710_v4   ;;  %1024 = vperm.xlu1 %1686, %v1006_v23  }
 0x2d4   : > { %v760_v49 = vpop.xlane.xlu1 %759 }
 0x2d5   : > { %v772_v26 = vadd.f32 %v760_v49, %v740_v22  ;;  %v790_v49 = vld [vmem:[#allocation4 + $0x30] sm:$0xff] }
 0x2d6   : > { %v1007_v25 = vld [vmem:[#allocation3 + $0x18] sm:$0xff] }
 0x2d7   : > { %781 = vst.msk [vmem:[#allocation3 + $0x28] sm:$0xff] %vm394_vm2, %v772_v26  ;;  %1029 = vperm.xlu0 %1685, %v1007_v25   ;;  %814 = vperm.xlu1 %1686, %v1712_v39  }
 0x2d8   : > { %v763_v59 = vpop.xlane.xlu0 %762 }
 0x2d9   : > { %v773_v31 = vadd.f32 %v763_v59, %v741_v57 }
 0x2da   : > { %v1008_v61 = vld [vmem:[#allocation3 + $0x20] sm:$0xff] }
 0x2db   : > { %782 = vst.msk [vmem:[#allocation3 + $0x30] sm:$0xff] %vm394_vm2, %v773_v31  ;;  %819 = vperm.xlu0 %1685, %v1714_v47   ;;  %1034 = vperm.xlu1 %1686, %v1008_v61  }
 0x2dc   : > { %v766_v6 = vpop.xlane.xlu1 %765 }
 0x2dd   : > { %v774_v7 = vadd.f32 %v766_v6, %v742_v5 }
 0x2de   : > { %v1009_v30 = vld [vmem:[#allocation3 + $0x28] sm:$0xff] }
 0x2df   : > { %783 = vst.msk [vmem:[#allocation3 + $0x38] sm:$0xff] %vm394_vm2, %v774_v7  ;;  %1039 = vperm.xlu0 %1685, %v1009_v30   ;;  %824 = vperm.xlu1 %1686, %v1716_v48  }
 0x2e0   : > { %v800_v21 = vpop.permute.xlu1 %799  ;;  %v795_v27 = vpop.permute.xlu0 %794 }
 0x2e1   : > { %v833_v28 = vmul.f32 %v800_v21, %v785_v18  ;;  %v832_v29 = vmul.f32 %v795_v27, %v784_v24 }
 0x2e2   : > { %v1010_v8 = vld [vmem:[#allocation3 + $0x30] sm:$0xff] }
 0x2e3   : > { %829 = vperm.xlu0 %1685, %v1718_v58   ;;  %1044 = vperm.xlu1 %1686, %v1010_v8  }
 0x2e6   : > { %v1011_v15 = vld [vmem:[#allocation3 + $0x38] sm:$0xff] }
 0x2e7   : > { %1049 = vperm.xlu0 %1685, %v1011_v15   ;;  %1078 = vperm.xlu1 %1686, %v1072_v9  }
 0x2eb   : > { %1083 = vperm.xlu0 %1685, %v1073_v35   ;;  %1088 = vperm.xlu1 %1686, %v1074_v16  }
 0x2ef   : > { %1093 = vperm.xlu0 %1685, %v1075_v17  }
 0x309   : > { %v1529_v32 = vpop.f32.mrb[0].mxu1 }
 0x30a   : > { %v970_v43 = vadd.f32 %v1529_v32, %v833_v28  ;;  %v930_v51 = vpop.f32.mrb[1].mxu1 }
 0x30b   : > { %v969_v40 = vadd.f32 %v930_v51, %v832_v29 }
 0x30c   : > { %978 = vst.msk [vmem:[#allocation4 + $0x8] sm:$0xff] %vm411_vm0, %v970_v43 }
 0x30d   : > { %977 = vst.msk [vmem:[#allocation4] sm:$0xff] %vm411_vm0, %v969_v40 }
 0x311   : > { %v1532_v42 = vpop.f32.mrb[2].mxu1 }
 0x312   : > { %v940_v45 = vpop.f32.mrb[3].mxu1 }
 0x313   : > { %v997_v12 = vld [vmem:[#allocation4 + $0x8] sm:$0xff] }
 0x314   : > { %v996_v47 = vld [vmem:[#allocation4] sm:$0xff] }
 0x319   : > { %v1535_v55 = vpop.f32.mrb[4].mxu1 }
 0x31a   : > { %v950_v33 = vpop.f32.mrb[5].mxu1 }
 0x321   : > { %v1538_v44 = vpop.f32.mrb[6].mxu1 }
 0x322   : > { %v960_v52 = vpop.f32.mrb[7].mxu1 }
 0x34a   : > { %v1015_v53 = vpop.permute.xlu1 %1014 }
 0x34b   : > { %1719 = vrcp.f32 %v1015_v53 }
 0x34e   : > { %v805_v62 = vpop.permute.xlu1 %804  ;;  %v1020_v3 = vpop.permute.xlu0 %1019 }
 0x34f   : > { %v834_v54 = vmul.f32 %v805_v62, %v786_v56  ;;  %1721 = vrcp.f32 %v1020_v3  ;;  %v1218_v62 = vld [vmem:[%s389_s16 + $0x8] sm:$0xff] }
 0x351   : > { %v971_v4 = vadd.f32 %v940_v45, %v834_v54 }
 0x352   : > { %v1025_v36 = vpop.permute.xlu1 %1024  ;;  %v810_v1 = vpop.permute.xlu0 %809 }
 0x353   : > { %979 = vst.msk [vmem:[#allocation4 + $0x10] sm:$0xff] %vm411_vm0, %v971_v4  ;;  %v835_v10 = vmul.f32 %v810_v1, %v787_v63  ;;  %1723 = vrcp.f32 %v1025_v36  ;;  %v1217_v63 = vld [vmem:[%s389_s16] sm:$0xff] }
 0x355   : > { %v972_v37 = vadd.f32 %v1532_v42, %v835_v10  ;;  %v1720_v2 = vpop.eup %1719 }
 0x356   : > { %v815_v38 = vpop.permute.xlu1 %814  ;;  %v1030_v39 = vpop.permute.xlu0 %1029  ;;  %v1053_v23 = vmul.f32 %v1720_v2, %v996_v47 }
 0x357   : > { %980 = vst.msk [vmem:[#allocation4 + $0x18] sm:$0xff] %vm411_vm0, %v972_v37  ;;  %v836_v11 = vmul.f32 %v815_v38, %v788_v13  ;;  %1725 = vrcp.f32 %v1030_v39  ;;  %v1220_v37 = vld [vmem:[%s389_s16 + $0x18] sm:$0xff] }
 0x359   : > { %v1722_v41 = vpop.eup %1721  ;;  %v973_v46 = vadd.f32 %v950_v33, %v836_v11  ;;  %v1069_v33 = vld [vmem:[%s2295_s4 + $0x8] sm:$0xff]  ;;  %v1219_v11 = vld [vmem:[%s389_s16 + $0x10] sm:$0xff] }
 0x35a   : > { %v1035_v19 = vpop.permute.xlu1 %1034  ;;  %v820_v20 = vpop.permute.xlu0 %819  ;;  %v1055_v22 = vmul.f32 %v1722_v41, %v997_v12  ;;  %v998_v5 = vld [vmem:[#allocation4 + $0x10] sm:$0xff] }
 0x35b   : > { %981 = vst.msk [vmem:[#allocation4 + $0x20] sm:$0xff] %vm411_vm0, %v973_v46  ;;  %v837_v48 = vmul.f32 %v820_v20, %v789_v14  ;;  %1727 = vrcp.f32 %v1035_v19 }
 0x35c   : > { %v1601_v50 = vpack.c.bf16 %v1055_v22, %v1053_v23 }
 0x35d   : > { %v974_v26 = vadd.f32 %v1535_v55, %v837_v48  ;;  %v1724_v58 = vpop.eup %1723 }
 0x35e   : > { %v825_v25 = vpop.permute.xlu1 %824  ;;  %1603 = vmatprep.subr.msk.bf16.mxu1 %vm1924_vm1, %v1601_v50  ;;  %v1040_v57 = vpop.permute.xlu0 %1039  ;;  %v999_v6 = vld [vmem:[#allocation4 + $0x18] sm:$0xff]  ;;  %v1057_v8 = vmul.f32 %v1724_v58, %v998_v5 }
 0x35f   : > { %982 = vst.msk [vmem:[#allocation4 + $0x28] sm:$0xff] %vm411_vm0, %v974_v26  ;;  %v838_v59 = vmul.f32 %v825_v25, %v790_v49  ;;  %1729 = vrcp.f32 %v1040_v57  ;;  %1606 = vmatpush3.bf16.xpose.msk.msra.mxu1 %vm1924_vm1, %v1601_v50 }
 0x361   : > { %v1726_v31 = vpop.eup %1725  ;;  %v975_v61 = vadd.f32 %v960_v52, %v838_v59  ;;  %v1071_v52 = vld [vmem:[%s2295_s4 + $0x18] sm:$0xff] }
 0x362   : > { %v1045_v7 = vpop.permute.xlu1 %1044  ;;  %v830_v30 = vpop.permute.xlu0 %829  ;;  %v1059_v9 = vmul.f32 %v1726_v31, %v999_v6  ;;  %v1000_v21 = vld [vmem:[#allocation4 + $0x20] sm:$0xff] }
 0x363   : > { %983 = vst.msk [vmem:[#allocation4 + $0x30] sm:$0xff] %vm411_vm0, %v975_v61  ;;  %v839_v15 = vmul.f32 %v830_v30, %v791_v60  ;;  %1731 = vrcp.f32 %v1045_v7 }
 0x364   : > { %v1607_v35 = vpack.c.bf16 %v1059_v9, %v1057_v8 }
 0x365   : > { %v976_v16 = vadd.f32 %v1538_v44, %v839_v15  ;;  %v1728_v34 = vpop.eup %1727  ;;  %v1070_v44 = vld [vmem:[%s2295_s4 + $0x10] sm:$0xff] }
 0x366   : > { %1609 = vmatprep.subr.msk.bf16.mxu1 %vm1924_vm1, %v1607_v35  ;;  %v1050_v17 = vpop.permute.xlu0 %1049  ;;  %v1001_v24 = vld [vmem:[#allocation4 + $0x28] sm:$0xff]  ;;  %v1061_v27 = vmul.f32 %v1728_v34, %v1000_v21  ;;  %v1079_v53 = vpop.permute.xlu1 %1078 }
 0x367   : > { %984 = vst.msk [vmem:[#allocation4 + $0x38] sm:$0xff] %vm411_vm0, %v976_v16  ;;  %1733 = vrcp.f32 %v1050_v17  ;;  %1612 = vmatpush3.bf16.xpose.msk.msra.mxu1 %vm1924_vm1, %v1607_v35 }
 0x369   : > { %v1730_v18 = vpop.eup %1729 }
 0x36a   : > { %v1063_v28 = vmul.f32 %v1730_v18, %v1001_v24  ;;  %v1002_v51 = vld [vmem:[#allocation4 + $0x30] sm:$0xff]  ;;  %v1084_v0 = vpop.permute.xlu0 %1083  ;;  %v1089_v38 = vpop.permute.xlu1 %1088 }
 0x36c   : > { %v1613_v29 = vpack.c.bf16 %v1063_v28, %v1061_v27 }
 0x36d   : > { %v1732_v32 = vpop.eup %1731 }
 0x36e   : > { %1615 = vmatprep.subr.msk.bf16.mxu1 %vm1924_vm1, %v1613_v29  ;;  %v1003_v40 = vld [vmem:[#allocation4 + $0x38] sm:$0xff]  ;;  %v1065_v42 = vmul.f32 %v1732_v32, %v1002_v51  ;;  %v1094_v1 = vpop.permute.xlu0 %1093 }
 0x36f   : > { %1618 = vmatpush3.bf16.xpose.msk.msra.mxu1 %vm1924_vm1, %v1613_v29 }
 0x371   : > { %v1734_v43 = vpop.eup %1733 }
 0x372   : > { %v1067_v45 = vmul.f32 %v1734_v43, %v1003_v40 }
 0x374   : > { %v1619_v55 = vpack.c.bf16 %v1067_v45, %v1065_v42 }
 0x376   : > { %1621 = vmatprep.subr.msk.bf16.mxu1 %vm1924_vm1, %v1619_v55 }
 0x377   : > { %1624 = vmatpush3.bf16.xpose.msk.msra.mxu1 %vm1924_vm1, %v1619_v55 }
 0x37e   : > { %1556 = vmatmul.mubr.msk.f32.vlgmr.msra.gmra.mrb[8].mxu1 %vm411_vm0, %v1069_v33 }
 0x37f   : > { %1558 = vmatprep.mubr.msk.f32.mxu1 %vm411_vm0, %v1070_v44 }
 0x382   : > { %1559 = vmatmul.mubr.msk.f32.gmra.mrb[10].mxu1 %vm411_vm0, %v1071_v52 }
 0x451   : > { %v1557_v56 = vpop.f32.mrb[8].mxu1 }
 0x452   : > { %v1204_v3 = vadd.f32 %v1557_v56, %v1084_v0  ;;  %v1198_v54 = vpop.f32.mrb[9].mxu1 }
 0x453   : > { %v1199_v4 = vadd.f32 %v1198_v54, %v1079_v53 }
 0x454   : > { %v1222_v36 = vadd.f32 %v1218_v62, %v1204_v3 }
 0x455   : > { %v1221_v10 = vadd.f32 %v1217_v63, %v1199_v4  ;;  %v1560_v13 = vpop.f32.mrb[10].mxu1 }
 0x456   : > { %1226 = vst.msk [vmem:[%s351_s18 + $0x8] sm:$0xff] %vm606_vm3, %v1222_v36  ;;  %v1214_v39 = vadd.f32 %v1560_v13, %v1094_v1  ;;  %v1208_v2 = vpop.f32.mrb[11].mxu1 }
 0x457   : > { %1225 = vst.msk [vmem:[%s351_s18] sm:$0xff] %vm606_vm3, %v1221_v10  ;;  %v1209_v14 = vadd.f32 %v1208_v2, %v1089_v38 }
 0x458   : > { %v1224_v41 = vadd.f32 %v1220_v37, %v1214_v39 }
 0x459   : > { %v1223_v46 = vadd.f32 %v1219_v11, %v1209_v14 }
 0x45a   : > { %1228 = vst.msk [vmem:[%s351_s18 + $0x18] sm:$0xff] %vm606_vm3, %v1224_v41 }
 0x45b   : > { %1227 = vst.msk [vmem:[%s351_s18 + $0x10] sm:$0xff] %vm606_vm3, %v1223_v46 }
 0x45c   : > { %1748 = shalt.err (!%p1745_p5)
}
 0x45d   : > { %s1749_s13 = scalar_lea.hbm %s2237_s28, 512  ;;  %s1753_s17 = scalar_lea.hbm %s2297_s6, 1024 }
 0x45e   : > { %p1750_p6 = scmp.ne.s32.totalorder %s2237_s28, %s1749_s13  ;;  %p1754_p10 = scmp.lt.u32.totalorder %s2237_s28, %s2297_s6 }
 0x45f   : > { %p1755_p11 = scmp.lt.u32.totalorder %s1753_s17, %s1749_s13  ;;  %p1757_p13 = scmp.lt.u32.totalorder %s1749_s13, %s2237_s28 }
 0x460   : > { %p1751_p7 = pnand %p1750_p6, %p1896_p4 }
 0x461   : > { %p1756_p12 = por %p1755_p11, %p1754_p10 }
 0x462   : > { %p1752_p9 = pneg %p1751_p7 }
 0x463   : > { %p1758_p0 = por %p1757_p13, %p1756_p12 }
 0x465   : > { %p1759_p1 = pnand %p1758_p0, %p1752_p9 }
 0x467   : > { %1762 = shalt.err (!%p1759_p1)
}
 0x468   : > { %s1819_s20 = smov 128   ;;  %s1820_s27 = smov 8  }
 0x469   : > { %1625 = dma.vmem_to_hbm [thread:$0]  (%p1896_p4), %s2239_s11, 512, %s2237_s28, %s2245_s24, %s1819_s20, %s1819_s20, %s1820_s27  }
 0x46a PF: > { %p1631_p2 = scmp.ge.s32.totalorder %s1813_s26, 2  ;;  %s1259_s30 = sand.u32 1, %s1793_s21  }
 0x46b   : > { %s1260_s8 = scalar_lea.sflag [#allocation6], %s1259_s30 }
 0x46c   : > { %p1628_p3 = pnand %p1631_p2, %p1903_p8 }
 0x46e   : > { %1788 = dma.done.wait (!%p1628_p3), %s1260_s8, 512  }
 0x46f   : > { %1790 = vsyncadd (!%p1628_p3), %s1260_s8, 4294966784  ;;  %s19_s26 = sadd.s32 1, %s1813_s26   ;;  %s2302_s21 = smov %s1797_s22 }
 0x470   : > { %p16_p5 = scmp.ge.s32.totalorder %s19_s26, 4   ;;  %s2303_s22 = smov %s1801_s23 }
 0x471   : > { %s2304_s23 = smov %s1909_s10  ;;  %s2305_s24 = smov %s1809_s25 }
 0x472   : > { %s2306_s25 = smov %s2308_s29  ;;  %18 = sbr.rel (!%p16_p5) target bundleno = 4 (0x4), region = 96 }
 0x479   :  { %1265 = vsyncpa [#allocation6], 1 }
 0x47a   :  { %1267 = vsyncpa [#allocation6 + $0x1], 1 }

</bundles_post_ra>
